<compile_context>
chip_gen: v7x
topology: tpu7x:2x2x1
jax: 0.10.0
libtpu: 0.0.40
codegen_flags: <defaults>
</compile_context>

<pallas_src>
import functools

import jax
import jax.numpy as jnp
from jax.experimental import pallas as pl
from jax.experimental.pallas import tpu as pltpu

LANES = 128
SUBLANES = 8

_CORE_PARALLEL = getattr(pltpu, "CORE_PARALLEL", None)
_ARBITRARY = getattr(pltpu, "ARBITRARY", "arbitrary")


def _device_kind():
    try:
        return jax.devices()[0].device_kind.lower()
    except Exception:
        return ""


def _bce_sum_kernel(x_ref, t_ref, out_ref, *, rows_valid, tile_rows, steps_per_core):
    """Accumulate sum of per-element BCE(logit, target) into an (8,128) partial."""
    if steps_per_core is None:
        # Single TensorCore: grid = (num_blocks,)
        blk = pl.program_id(0)
        is_first = blk == 0
    else:
        # Multi-TC split: grid = (num_cores, steps_per_core)
        c = pl.program_id(0)
        j = pl.program_id(1)
        blk = c * steps_per_core + j
        is_first = j == 0

    @pl.when(is_first)
    def _():
        out_ref[...] = jnp.zeros_like(out_ref)

    x = x_ref[...].astype(jnp.float32)
    t = t_ref[...].astype(jnp.float32)
    # Numerically-stable per-element BCE on logits:
    #   -(t*log(sigmoid(x)) + (1-t)*log(1-sigmoid(x))) == softplus(x) - t*x
    bce = jax.nn.softplus(x) - t * x

    def _fold_add(v):
        # Fold (tile_rows, 128) into the (8, 128) resident accumulator block
        # with pure VPU adds; the cross-lane reduce happens once, outside.
        out_ref[...] += v.reshape(tile_rows // SUBLANES, SUBLANES, LANES).sum(axis=0)

    # Only blocks touching the valid-row boundary (last / clamped blocks) pay
    # for the iota + mask; interior blocks take the unmasked fast path.
    # Masking is at row granularity so the index math stays well inside int32.
    needs_mask = (blk + 1) * tile_rows > rows_valid

    @pl.when(jnp.logical_not(needs_mask))
    def _():
        _fold_add(bce)

    @pl.when(needs_mask)
    def _():
        row = jax.lax.broadcasted_iota(jnp.int32, (tile_rows, LANES), 0)
        valid = (blk * tile_rows + row) < rows_valid
        _fold_add(jnp.where(valid, bce, jnp.float32(0.0)))


def _bce_sum_pallas(x2, t2, rows):
    """Sum of BCE-with-logits over a (rows, 128) layout via a streaming reduction."""
    kind = _device_kind()

    # Core split only where there is more than one TensorCore per device.
    if "v7" in kind and _CORE_PARALLEL is not None:
        num_cores, core_sem, red_sem = 2, _CORE_PARALLEL, _ARBITRARY
    elif any(k in kind for k in ("v7", "v4", "v5p")):
        num_cores, core_sem, red_sem = 2, "parallel", "arbitrary"
    else:
        num_cores, core_sem, red_sem = 1, None, "arbitrary"

    # Large tiles amortize the ~0.35us per-step overhead; cap lower on chips
    # with a 16 MiB default scoped-VMEM budget / slower HBM.
    max_tile_rows = 8192 if ("v6" in kind or "v7" in kind) else 4096
    tile_rows = min(max_tile_rows, (rows // SUBLANES) * SUBLANES)
    num_blocks = pl.cdiv(rows, tile_rows)

    if num_cores > 1 and num_blocks > 1:
        steps_per_core = pl.cdiv(num_blocks, num_cores)
        grid = (num_cores, steps_per_core)
        last_blk = num_blocks - 1

        def in_map(c, j):
            # Clamp so the DMA always targets a real block; logically
            # out-of-range steps are fully masked inside the kernel.
            return (jnp.minimum(c * steps_per_core + j, last_blk), 0)

        out_map = lambda c, j: (c, 0)
        out_rows = num_cores * SUBLANES
        dim_sems = (core_sem, red_sem)
    else:
        steps_per_core = None
        grid = (num_blocks,)
        in_map = lambda j: (j, 0)
        out_map = lambda j: (0, 0)
        out_rows = SUBLANES
        dim_sems = (red_sem,)

    kernel = functools.partial(
        _bce_sum_kernel,
        rows_valid=rows,
        tile_rows=tile_rows,
        steps_per_core=steps_per_core,
    )

    bytes_per_elem = x2.dtype.itemsize + t2.dtype.itemsize
    in_tile_bytes = tile_rows * LANES * bytes_per_elem
    # Double-buffered inputs + headroom, explicitly covered by the scoped limit.
    vmem_limit_bytes = min(max(32 << 20, 2 * in_tile_bytes + (8 << 20)), 60 << 20)

    partials = pl.pallas_call(
        kernel,
        out_shape=jax.ShapeDtypeStruct((out_rows, LANES), jnp.float32),
        grid_spec=pltpu.PrefetchScalarGridSpec(
            num_scalar_prefetch=0,
            grid=grid,
            in_specs=[
                pl.BlockSpec((tile_rows, LANES), in_map),
                pl.BlockSpec((tile_rows, LANES), in_map),
            ],
            out_specs=pl.BlockSpec((SUBLANES, LANES), out_map),
        ),
        compiler_params=pltpu.CompilerParams(
            dimension_semantics=dim_sems,
            vmem_limit_bytes=vmem_limit_bytes,
        ),
        cost_estimate=pl.CostEstimate(
            flops=4 * rows * LANES,
            transcendentals=2 * rows * LANES,
            bytes_accessed=rows * LANES * bytes_per_elem + out_rows * LANES * 4,
        ),
    )(x2, t2)

    return jnp.sum(partials)


def focal_loss(inputs, targets, alpha=0.25, gamma=2.0):
    """Pallas implementation of FocalLoss.forward. Returns a scalar float32.

    The kernel is HBM-bandwidth bound: pass bf16 logits / bf16 (or integer
    {0,1}) targets straight from the producer for a 1.6-2.7x speedup; the
    upcast to f32 happens inside the kernel, so accuracy of the reduction is
    unchanged.
    """
    x = inputs.reshape(-1)
    t = targets.reshape(-1)
    n = x.shape[0]

    rows = n // LANES
    main = rows * LANES if rows >= SUBLANES else 0

    # Remainder handled with plain jnp (at most 1023 elements, usually <128):
    # avoids any whole-array padding copy.
    if main < n:
        xr = x[main:].astype(jnp.float32)
        tr = t[main:].astype(jnp.float32)
        rem_sum = jnp.sum(jax.nn.softplus(xr) - tr * xr)
    else:
        rem_sum = jnp.float32(0.0)

    if main > 0:
        x2 = x[:main].reshape(rows, LANES)
        t2 = t[:main].reshape(rows, LANES)
        bce_sum = _bce_sum_pallas(x2, t2, rows) + rem_sum
    else:
        bce_sum = rem_sum

    # Cheap scalar epilogue: mean BCE -> focal transform (matches the module:
    # mean BCE first, then the focal weighting on the scalar).
    bce = bce_sum / jnp.float32(n)
    bce_exp = jnp.exp(-bce)
    return alpha * (1.0 - bce_exp) ** gamma * bce


def focal_loss_ref(inputs, targets, alpha=0.25, gamma=2.0):
    p = jax.nn.sigmoid(inputs.astype(jnp.float32)).reshape(-1)
    t = targets.astype(jnp.float32).reshape(-1)
    bce = jnp.mean(-(t * jnp.log(p) + (1.0 - t) * jnp.log1p(-p)))
    bce_exp = jnp.exp(-bce)
    return alpha * (1.0 - bce_exp) ** gamma * bce


if __name__ == "__main__":
    key = jax.random.PRNGKey(0)
    k1, k2, k3, k4 = jax.random.split(key, 4)

    # NCHW logits and binary mask targets (numel % 128 == 0 path).
    shape = (2, 4, 16, 16)
    inputs = jax.random.normal(k1, shape, dtype=jnp.float32)
    targets = (jax.random.uniform(k2, shape) > 0.5).astype(jnp.float32)

    loss = jax.block_until_ready(focal_loss(inputs, targets, alpha=0.25, gamma=2.0))
    ref = jax.block_until_ready(focal_loss_ref(inputs, targets, alpha=0.25, gamma=2.0))
    assert jnp.allclose(loss, ref, atol=1e-5, rtol=1e-5), (loss, ref)

    # Ragged case: exercises the partial last block, in-kernel row mask and
    # the jnp tail epilogue (1155 elements = 9 full rows + 3 tail elements).
    shape2 = (3, 5, 7, 11)
    inputs2 = jax.random.normal(k3, shape2, dtype=jnp.float32)
    targets2 = (jax.random.uniform(k4, shape2) > 0.5).astype(jnp.float32)

    loss2 = jax.block_until_ready(focal_loss(inputs2, targets2, alpha=0.25, gamma=2.0))
    ref2 = jax.block_until_ready(focal_loss_ref(inputs2, targets2, alpha=0.25, gamma=2.0))
    assert jnp.allclose(loss2, ref2, atol=1e-5, rtol=1e-5), (loss2, ref2)

    print("KERNEL_OK")
</pallas_src>

<mosaic_0001>
module attributes {stable_mosaic.version = 11 : i64} {
  func.func @_bce_sum_kernel(%arg0: i32, %arg1: memref<16x128xf32, #tpu.memory_space<vmem>>, %arg2: memref<16x128xf32, #tpu.memory_space<vmem>>, %arg3: memref<8x128xf32, #tpu.memory_space<vmem>>) attributes {dimension_semantics = [#tpu.dimension_semantics<arbitrary>], iteration_bounds = array<i64: 1>, scalar_prefetch = 0 : i64, scratch_operands = 0 : i64, tpu.core_type = #tpu.core_type<tc>, window_params = [{transform_indices = @transform_0, window_bounds = array<i64: 16, 128>}, {transform_indices = @transform_1, window_bounds = array<i64: 16, 128>}, {pipeline_mode = #tpu.pipeline_mode<synchronous>, transform_indices = @transform_2, window_bounds = array<i64: 8, 128>}]} {
    %c0_i32 = arith.constant 0 : i32
    %0 = arith.cmpi eq, %arg0, %c0_i32 : i32
    %1 = arith.extui %0 : i1 to i32
    %c0_i32_0 = arith.constant 0 : i32
    %2 = arith.cmpi ne, %1, %c0_i32_0 : i32
    scf.if %2 {
      %cst_8 = arith.constant 0.000000e+00 : f32
      %29 = vector.broadcast %cst_8 : f32 to vector<8x128xf32>
      %c0_9 = arith.constant 0 : index
      %c0_10 = arith.constant 0 : index
      %30 = vector.load %arg3[%c0_9, %c0_10] : memref<8x128xf32, #tpu.memory_space<vmem>>, vector<8x128xf32>
      tpu.vector_store %arg3[%c0_9, %c0_10], %29 {strides = array<i32>} : memref<8x128xf32, #tpu.memory_space<vmem>>, vector<8x128xf32>,
    } else {
    }
    %c0 = arith.constant 0 : index
    %c0_1 = arith.constant 0 : index
    %3 = vector.load %arg1[%c0, %c0_1] : memref<16x128xf32, #tpu.memory_space<vmem>>, vector<16x128xf32>
    %c0_2 = arith.constant 0 : index
    %c0_3 = arith.constant 0 : index
    %4 = vector.load %arg2[%c0_2, %c0_3] : memref<16x128xf32, #tpu.memory_space<vmem>>, vector<16x128xf32>
    %cst = arith.constant 0.000000e+00 : f32
    %5 = vector.broadcast %cst : f32 to vector<16x128xf32>
    %6 = arith.maximumf %3, %5 : vector<16x128xf32>
    %7 = vector.broadcast %cst : f32 to vector<16x128xf32>
    %8 = arith.subf %3, %7 : vector<16x128xf32>
    %9 = arith.cmpf one, %8, %8 : vector<16x128xf32>
    %10 = vector.broadcast %cst : f32 to vector<16x128xf32>
    %11 = arith.addf %3, %10 : vector<16x128xf32>
    %12 = math.absf %8 : vector<16x128xf32>
    %cst_4 = arith.constant 0.000000e+00 : f32
    %13 = vector.broadcast %cst_4 : f32 to vector<16x128xf32>
    %14 = arith.subf %13, %12 : vector<16x128xf32>
    %15 = math.exp %14 : vector<16x128xf32>
    %16 = math.log1p %15 : vector<16x128xf32>
    %17 = arith.addf %6, %16 : vector<16x128xf32>
    %18 = arith.select %9, %11, %17 : vector<16x128xi1>, vector<16x128xf32>
    %19 = arith.mulf %4, %3 : vector<16x128xf32>
    %20 = arith.subf %18, %19 : vector<16x128xf32>
    %c1_i32 = arith.constant 1 : i32
    %21 = arith.addi %arg0, %c1_i32 : i32
    %c16_i32 = arith.constant 16 : i32
    %22 = arith.muli %21, %c16_i32 : i32
    %c16_i32_5 = arith.constant 16 : i32
    %23 = arith.cmpi sgt, %22, %c16_i32_5 : i32
    %true = arith.constant true
    %24 = arith.xori %23, %true : i1
    %25 = arith.extui %24 : i1 to i32
    %c0_i32_6 = arith.constant 0 : i32
    %26 = arith.cmpi ne, %25, %c0_i32_6 : i32
    scf.if %26 {
      %c0_8 = arith.constant 0 : index
      %c0_9 = arith.constant 0 : index
      %29 = vector.load %arg3[%c0_8, %c0_9] : memref<8x128xf32, #tpu.memory_space<vmem>>, vector<8x128xf32>
      %30 = vector.shape_cast %20 : vector<16x128xf32> to vector<2x8x128xf32>
      %cst_10 = arith.constant dense<0.000000e+00> : vector<8x128xf32>
      %31 = vector.multi_reduction <add>, %30, %cst_10 [0] : vector<2x8x128xf32> to vector<8x128xf32>
      %32 = arith.addf %29, %31 : vector<8x128xf32>
      %c0_11 = arith.constant 0 : index
      %c0_12 = arith.constant 0 : index
      %33 = vector.load %arg3[%c0_11, %c0_12] : memref<8x128xf32, #tpu.memory_space<vmem>>, vector<8x128xf32>
      tpu.vector_store %arg3[%c0_11, %c0_12], %32 {strides = array<i32>} : memref<8x128xf32, #tpu.memory_space<vmem>>, vector<8x128xf32>,
    } else {
    }
    %27 = arith.extui %23 : i1 to i32
    %c0_i32_7 = arith.constant 0 : i32
    %28 = arith.cmpi ne, %27, %c0_i32_7 : i32
    scf.if %28 {
      %29 = tpu.iota {dimensions = array<i32: 0>} : vector<16x128xi32>
      %c16_i32_8 = arith.constant 16 : i32
      %30 = arith.muli %arg0, %c16_i32_8 : i32
      %31 = vector.broadcast %30 : i32 to vector<16x128xi32>
      %32 = arith.addi %31, %29 : vector<16x128xi32>
      %c16_i32_9 = arith.constant 16 : i32
      %33 = vector.broadcast %c16_i32_9 : i32 to vector<16x128xi32>
      %34 = arith.cmpi slt, %32, %33 : vector<16x128xi32>
      %cst_10 = arith.constant 0.000000e+00 : f32
      %35 = vector.broadcast %cst_10 : f32 to vector<16x128xf32>
      %36 = arith.select %34, %20, %35 : vector<16x128xi1>, vector<16x128xf32>
      %c0_11 = arith.constant 0 : index
      %c0_12 = arith.constant 0 : index
      %37 = vector.load %arg3[%c0_11, %c0_12] : memref<8x128xf32, #tpu.memory_space<vmem>>, vector<8x128xf32>
      %38 = vector.shape_cast %36 : vector<16x128xf32> to vector<2x8x128xf32>
      %cst_13 = arith.constant dense<0.000000e+00> : vector<8x128xf32>
      %39 = vector.multi_reduction <add>, %38, %cst_13 [0] : vector<2x8x128xf32> to vector<8x128xf32>
      %40 = arith.addf %37, %39 : vector<8x128xf32>
      %c0_14 = arith.constant 0 : index
      %c0_15 = arith.constant 0 : index
      %41 = vector.load %arg3[%c0_14, %c0_15] : memref<8x128xf32, #tpu.memory_space<vmem>>, vector<8x128xf32>
      tpu.vector_store %arg3[%c0_14, %c0_15], %40 {strides = array<i32>} : memref<8x128xf32, #tpu.memory_space<vmem>>, vector<8x128xf32>,
    } else {
    }
    return
  }
  func.func @transform_0(%arg0: i32) -> (i32, i32) {
    %c0_i32 = arith.constant 0 : i32
    %c0_i32_0 = arith.constant 0 : i32
    return %arg0, %c0_i32 : i32, i32
  }
  func.func @transform_1(%arg0: i32) -> (i32, i32) {
    %c0_i32 = arith.constant 0 : i32
    %c0_i32_0 = arith.constant 0 : i32
    return %arg0, %c0_i32 : i32, i32
  }
  func.func @transform_2(%arg0: i32) -> (i32, i32) {
    %c0_i32 = arith.constant 0 : i32
    %c0_i32_0 = arith.constant 0 : i32
    %c0_i32_1 = arith.constant 0 : i32
    return %c0_i32, %c0_i32_0 : i32, i32
  }
}

</mosaic_0001>

<bundles_post_ra>
// kernel: tpu_custom_call.1
= control target key start
LH: loop header
LB: loop body
LE: loop exit
PB: predicated region body
PF: predicated region fallthrough
CT: control target
= control target key end

     0   :  { %7 = vsyncpa [#allocation3], 0  ;;  %s276_s0 = inlined_call_operand.hbm [shape: f32[16,128], index: 0, kind: input, shape index: {}]   ;;  %s277_s1 = inlined_call_operand.hbm [shape: f32[16,128], index: 1, kind: input, shape index: {}]   ;;  %s278_s2 = inlined_call_operand.hbm [shape: f32[8,128], index: 2, kind: output, shape index: {}]  }
   0x1   :  { %8 = vsyncpa [#allocation6], 0 }
   0x2   :  { %9 = vsyncpa [#allocation4], 0  ;;  %s220_s9 = smov [#allocation2]   ;;  %s148_s13 = scalar_lea.hbm %s276_s0, 256 }
   0x3   :  { %s15_s10 = sshll.u32 %s220_s9, 4  ;;  %p149_p0 = scmp.ne.s32.totalorder %s276_s0, %s148_s13  ;;  %s16_s10 = int_to_ptr.vmem [resolvable:$true] %s15_s10 }
   0x4   :  { %p152_p1 = scmp.lt.u32.totalorder %s148_s13, %s276_s0 }
   0x6   :  { %p154_p2 = pnand %p152_p1, %p149_p0 }
   0x8   :  { %157 = shalt.err (!%p154_p2)
}
   0x9   :  { %s158_s18 = scalar_lea.vmem %s16_s10, 256  ;;  %p163_p4 = scmp.lt.s32.totalorder %s16_s10, %s16_s10 }
   0xa   :  { %p159_p3 = scmp.ne.s32.totalorder %s16_s10, %s158_s18  ;;  %p164_p5 = scmp.lt.s32.totalorder %s158_s18, %s158_s18 }
   0xc   :  { %p165_p6 = por %p164_p5, %p163_p4 }
   0xe   :  { %p166_p7 = pnand %p165_p6, %p159_p3 }
  0x10   :  { %169 = shalt.err (!%p166_p7)
}
  0x11   :  { %s221_s19 = smov 128   ;;  %s222_s20 = smov 8  }
  0x12   :  { %21 = dma.hbm_to_vmem [thread:$0]  %s276_s0, 256, %s16_s10, [#allocation3], %s221_s19, %s221_s19, %s222_s20  }
  0x13   :  { %s223_s23 = smov [#allocation5]   ;;  %s170_s27 = scalar_lea.hbm %s277_s1, 256 }
  0x14   :  { %s27_s24 = sshll.u32 %s223_s23, 4  ;;  %p171_p8 = scmp.ne.s32.totalorder %s277_s1, %s170_s27  ;;  %s28_s24 = int_to_ptr.vmem [resolvable:$true] %s27_s24 }
  0x15   :  { %p174_p9 = scmp.lt.u32.totalorder %s170_s27, %s277_s1 }
  0x17   :  { %p176_p10 = pnand %p174_p9, %p171_p8 }
  0x19   :  { %179 = shalt.err (!%p176_p10)
}
  0x1a   :  { %s180_s4 = scalar_lea.vmem %s28_s24, 256  ;;  %p185_p12 = scmp.lt.s32.totalorder %s28_s24, %s28_s24 }
  0x1b   :  { %p181_p11 = scmp.ne.s32.totalorder %s28_s24, %s180_s4  ;;  %p186_p13 = scmp.lt.s32.totalorder %s180_s4, %s180_s4 }
  0x1d   :  { %p187_p0 = por %p186_p13, %p185_p12 }
  0x1f   :  { %p188_p1 = pnand %p187_p0, %p181_p11 }
  0x21   :  { %191 = shalt.err (!%p188_p1)
}
  0x22   :  { %33 = dma.hbm_to_vmem [thread:$0]  %s277_s1, 256, %s28_s24, [#allocation6], %s221_s19, %s221_s19, %s222_s20  }
  0x23   :  { %214 = dma.done.wait [#allocation3], 256  }
  0x24   :  { %215 = vsyncadd [#allocation3], 4294967040 }
  0x25   :  { %216 = dma.done.wait [#allocation6], 256  }
  0x26   :  { %217 = vsyncadd [#allocation6], 4294967040  ;;  %v45_v0 = vld [vmem:[#allocation2] sm:$0xff]  ;;  %v46_v1 = vld [vmem:[#allocation2 + $0x8] sm:$0xff]  ;;  %s224_s1 = smov [#allocation7]  }
  0x27   :  { %v55_v2 = vand.u32 2147483647, %v45_v0  ;;  %v56_v3 = vand.u32 2147483647, %v46_v1  ;;  %v47_v20 = vld [vmem:[#allocation5] sm:$0xff]  ;;  %v49_v21 = vmax.f32 %v45_v0, 0.0  ;;  %vm51_vm2 = vcmp.ne.f32.partialorder %v45_v0, %v45_v0 }
  0x28   :  { %v48_v24 = vld [vmem:[#allocation5 + $0x8] sm:$0xff]  ;;  %v50_v25 = vmax.f32 %v46_v1, 0.0  ;;  %v85_v29 = vmul.f32 %v47_v20, %v45_v0  ;;  %vm52_vm3 = vcmp.ne.f32.partialorder %v46_v1, %v46_v1  ;;  %s124_s6 = sshll.u32 %s224_s1, 4  ;;  %s125_s6 = int_to_ptr.vmem [resolvable:$true] %s124_s6 }
  0x29   :  { %v57_v4 = vsub.f32 0.0, %v55_v2  ;;  %v58_v5 = vsub.f32 0.0, %v56_v3  ;;  %v86_v32 = vmul.f32 %v48_v24, %v46_v1  ;;  %s192_s7 = scalar_lea.vmem %s125_s6, 128  ;;  %p197_p3 = scmp.lt.s32.totalorder %s125_s6, %s125_s6 }
  0x2a   :  { %p193_p2 = scmp.ne.s32.totalorder %s125_s6, %s192_s7  ;;  %p198_p4 = scmp.lt.s32.totalorder %s192_s7, %s192_s7 }
  0x2b   :  { %v59_v6 = vmul.f32 1.442695, %v57_v4  ;;  %v61_v7 = vmul.f32 1.442695, %v58_v5 }
  0x2c   :  { %p199_p5 = por %p198_p4, %p197_p3 }
  0x2d   :  { %140 = vpow2.f32 %v59_v6 }
  0x2e   :  { %142 = vpow2.f32 %v61_v7  ;;  %p200_p6 = pnand %p199_p5, %p193_p2 }
  0x37   :  { %v141_v8 = vpop.eup %140 }
  0x38   :  { %v143_v9 = vpop.eup %142  ;;  %v63_v10 = vadd.f32 1.0, %v141_v8  ;;  %v66_v12 = vmul.f32 -0.5, %v141_v8  ;;  %v69_v15 = vand.u32 2147483647, %v141_v8 }
  0x39   :  { %v72_v11 = vadd.f32 1.0, %v143_v9  ;;  %v75_v13 = vmul.f32 -0.5, %v143_v9  ;;  %v78_v17 = vand.u32 2147483647, %v143_v9 }
  0x3a   :  { %144 = vlog2.f32 %v63_v10  ;;  %v67_v14 = vadd.f32 1.0, %v66_v12  ;;  %vm70_vm0 = vcmp.lt.f32.partialorder %v69_v15, 0.0004427343 }
  0x3b   :  { %146 = vlog2.f32 %v72_v11  ;;  %v76_v16 = vadd.f32 1.0, %v75_v13  ;;  %vm79_vm1 = vcmp.lt.f32.partialorder %v78_v17, 0.0004427343 }
  0x3c   :  { %v68_v18 = vmul.f32 %v141_v8, %v67_v14 }
  0x3d   :  { %v77_v22 = vmul.f32 %v143_v9, %v76_v16 }
  0x44   :  { %v145_v19 = vpop.eup %144 }
  0x45   :  { %v147_v23 = vpop.eup %146  ;;  %v65_v26 = vmul.f32 0.6931472, %v145_v19 }
  0x46   :  { %v74_v27 = vmul.f32 0.6931472, %v147_v23 }
  0x47   :  { %v71_v28 = vsel %vm70_vm0, %v68_v18, %v65_v26 }
  0x48   :  { %v80_v30 = vsel %vm79_vm1, %v77_v22, %v74_v27  ;;  %v81_v31 = vadd.f32 %v71_v28, %v49_v21 }
  0x49   :  { %v82_v33 = vadd.f32 %v80_v30, %v50_v25 }
  0x4a   :  { %v83_v34 = vsel %vm51_vm2, %v45_v0, %v81_v31 }
  0x4b   :  { %v84_v35 = vsel %vm52_vm3, %v46_v1, %v82_v33  ;;  %v87_v36 = vsub.f32 %v83_v34, %v85_v29 }
  0x4c   :  { %v88_v37 = vsub.f32 %v84_v35, %v86_v32 }
  0x4e   :  { %v97_v38 = vadd.f32 %v88_v37, %v87_v36 }
  0x50   :  { %99 = vst [vmem:[#allocation7] sm:$0xff] %v97_v38 }
  0x51   :  { %203 = shalt.err (!%p200_p6)
}
  0x52   :  { %s204_s10 = scalar_lea.hbm %s278_s2, 128 }
  0x53   :  { %p205_p7 = scmp.ne.s32.totalorder %s278_s2, %s204_s10  ;;  %p208_p8 = scmp.lt.u32.totalorder %s204_s10, %s278_s2 }
  0x55   :  { %p210_p9 = pnand %p208_p8, %p205_p7 }
  0x57   :  { %213 = shalt.err (!%p210_p9)
}
  0x58   :  { %127 = dma.vmem_to_hbm [thread:$0]  %s125_s6, 128, %s278_s2, [#allocation4]  }
  0x59   :  { %218 = dma.done.wait [#allocation4], 128  }
  0x5a   :  { %219 = vsyncadd [#allocation4], 4294967168 }
  0x5b   :  { %131 = vsyncpa [#allocation3], 1 }
  0x5c   :  { %132 = vsyncpa [#allocation6], 1 }
  0x5d   :  { %133 = vsyncpa [#allocation4], 1 }

</bundles_post_ra>
